<compile_context>
chip_gen: v5e
topology: v5e:2x2
jax: 0.10.0
libtpu: 0.0.40
codegen_flags: <defaults>
</compile_context>

<pallas_src>
import math

import jax
import jax.numpy as jnp
from jax.experimental import pallas as pl
from jax.experimental.pallas import tpu as pltpu

_LANE = 128


def _round_up(v, m):
    return (v + m - 1) // m * m


def _choose_tk(d1, batch, d2, tk_request):
    """Pick the D1 (reduction) tile so each grid step streams a multi-MiB W1
    slab while the layout-padded double buffers stay well inside v7x VMEM."""
    # Padded VMEM bytes per unit of tk (double-buffered):
    #   x  : f32  (B, tk) -> B rounded to 8 sublanes, tk lanes   -> 4*ceil8(B)
    #   W1 : bf16 (tk,D2) -> D2 padded to 128 lanes (lane-sparse) -> 2*128
    per_row = 2 * (4 * _round_up(batch, 8) + 2 * _round_up(d2, _LANE))
    budget = 36 * 1024 * 1024                      # streamed-buffer budget (v7x-safe)
    tk_cap = max(_LANE, (budget // per_row) // _LANE * _LANE)
    if d1 <= min(tk_request, tk_cap):
        return d1                                  # single full-extent block
    return max(_LANE, (min(tk_request, tk_cap) // _LANE) * _LANE)


def _mlp_softmax_kernel(x_ref, w1_ref, b1_ref, w2_ref, b2_ref, w3_ref, b3_ref,
                        out_ref, acc_ref):
    k = pl.program_id(0)

    @pl.when(k == 0)
    def _init():
        acc_ref[...] = jnp.zeros_like(acc_ref)

    # x streamed f32 (no extra wrapper cast pass over HBM); cast to bf16 on
    # the VPU so the MXU runs a bf16 x bf16 -> f32 matmul against bf16 W1.
    acc_ref[...] += jnp.dot(x_ref[...].astype(jnp.bfloat16), w1_ref[...],
                            preferred_element_type=jnp.float32)

    @pl.when(k == pl.num_programs(0) - 1)
    def _epilogue():
        h1 = jnp.maximum(acc_ref[...] + b1_ref[...], 0.0)                 # (B, D2)
        h2 = jnp.dot(h1, w2_ref[...], preferred_element_type=jnp.float32)
        h2 = jnp.maximum(h2 + b2_ref[...], 0.0)                           # (B, D2)

        # Layer 3 has N=1: VPU/XLU lane reduction instead of an MXU pass.
        logits = jnp.sum(h2 * w3_ref[...], axis=-1, keepdims=True) + b3_ref[...]

        # softmax along axis 0 (the batch), matching torch.softmax(w, dim=0).
        m = jnp.max(logits, axis=0, keepdims=True)
        e = jnp.exp(logits - m)
        denom = jnp.sum(e, axis=0, keepdims=True)
        out_ref[...] = (e / denom).astype(out_ref.dtype)   # exact divide: sums to 1


def prepare_weights(params, batch_size, *, tk=32768):
    """One-time prep, hoisted out of the hot path: cast W1 to bf16, pad its
    reduction axis to a multiple of the chosen tile, and reshape w3/biases."""
    w1, b1, w2, b2, w3, b3 = params
    d1, d2 = w1.shape
    tk_eff = _choose_tk(d1, batch_size, d2, tk)
    d1_padded = int(pl.cdiv(d1, tk_eff)) * tk_eff
    w1_bf16 = w1.astype(jnp.bfloat16)
    if d1_padded != d1:
        w1_bf16 = jnp.pad(w1_bf16, ((0, d1_padded - d1), (0, 0)))
    return dict(
        w1=w1_bf16,
        b1=b1.reshape(1, d2),
        w2=w2,
        b2=b2.reshape(1, d2),
        w3_row=w3.reshape(1, d2),
        b3=b3.reshape(1, 1),
        d1=d1, d2=d2, d1_padded=d1_padded, tk=tk_eff,
    )


def weight_predictor_forward(feature_map, prepared):
    """feature_map: (B, C, H, W) float32. Returns (B, 1) float32 softmax weights."""
    B = feature_map.shape[0]
    x = feature_map.reshape(B, -1)                 # f32, streamed directly
    d1, d2 = prepared["d1"], prepared["d2"]
    d1_padded, tk = prepared["d1_padded"], prepared["tk"]
    assert x.shape[1] == d1, (x.shape, d1)

    if d1_padded != d1:
        # Cheap relative to W1 (B rows only); zeros add nothing to the dot.
        x = jnp.pad(x, ((0, 0), (0, d1_padded - d1)))
    num_k = d1_padded // tk

    # VMEM budget with Mosaic layout padding accounted for.
    x_tile = _round_up(B, 8) * _round_up(tk, _LANE) * 4          # f32 x tile
    w1_tile = _round_up(tk, 16) * _round_up(d2, _LANE) * 2       # bf16, lane-padded
    resident = (_round_up(B, 8) * _LANE * 4                      # f32 accumulator
                + _round_up(d2, 8) * _LANE * 4                   # W2
                + 3 * 8 * _LANE * 4                              # b1, b2, w3_row
                + 8 * _LANE * 4                                  # b3
                + _round_up(B, 8) * _LANE * 4)                   # out block
    per_step = 2 * (x_tile + w1_tile) + resident                 # double-buffered
    vmem_limit = int(min(max(per_step + per_step // 2, 4 << 20), 48 << 20))

    grid_spec = pltpu.PrefetchScalarGridSpec(
        num_scalar_prefetch=0,
        grid=(num_k,),
        in_specs=[
            pl.BlockSpec((B, tk), lambda k: (0, k)),       # x tile  (f32)
            pl.BlockSpec((tk, d2), lambda k: (k, 0)),      # W1 tile (bf16)
            pl.BlockSpec((1, d2), lambda k: (0, 0)),       # b1
            pl.BlockSpec((d2, d2), lambda k: (0, 0)),      # W2
            pl.BlockSpec((1, d2), lambda k: (0, 0)),       # b2
            pl.BlockSpec((1, d2), lambda k: (0, 0)),       # w3 row
            pl.BlockSpec((1, 1), lambda k: (0, 0)),        # b3
        ],
        out_specs=pl.BlockSpec((B, 1), lambda k: (0, 0)),
        scratch_shapes=[pltpu.VMEM((B, d2), jnp.float32)],  # layer-1 accumulator
    )

    cost = pl.CostEstimate(
        flops=2 * B * (d1 * d2 + d2 * d2 + d2),
        transcendentals=B,
        bytes_accessed=(B * d1_padded * 4                  # f32 x
                        + d1_padded * d2 * 2               # bf16 W1
                        + (d2 * d2 + 3 * d2 + 1) * 4       # small f32 params
                        + B * 4),                          # output
    )

    return pl.pallas_call(
        _mlp_softmax_kernel,
        out_shape=jax.ShapeDtypeStruct((B, 1), jnp.float32),
        grid_spec=grid_spec,
        compiler_params=pltpu.CompilerParams(
            dimension_semantics=("arbitrary",),            # K is a reduction
            vmem_limit_bytes=vmem_limit,
        ),
        cost_estimate=cost,
    )(x, prepared["w1"], prepared["b1"], prepared["w2"], prepared["b2"],
      prepared["w3_row"], prepared["b3"])


def init_params(key, feature_dim_1, feature_dim_2):
    """PyTorch-style uniform(-1/sqrt(fan_in), 1/sqrt(fan_in)) init.

    Weights stored as (in_features, out_features) (i.e. W.T of nn.Linear),
    biases as (1, out_features).
    """
    ks = jax.random.split(key, 6)

    def lin(kw, kb, fan_in, fan_out):
        bound = 1.0 / math.sqrt(fan_in)
        w = jax.random.uniform(kw, (fan_in, fan_out), jnp.float32, -bound, bound)
        b = jax.random.uniform(kb, (1, fan_out), jnp.float32, -bound, bound)
        return w, b

    w1, b1 = lin(ks[0], ks[1], feature_dim_1, feature_dim_2)
    w2, b2 = lin(ks[2], ks[3], feature_dim_2, feature_dim_2)
    w3, b3 = lin(ks[4], ks[5], feature_dim_2, 1)
    return (w1, b1, w2, b2, w3, b3)


def _reference(feature_map, params):
    """Pure-JAX reference with the same bf16 rounding of x/W1 as the kernel."""
    w1, b1, w2, b2, w3, b3 = params
    x = feature_map.reshape(feature_map.shape[0], -1)
    xb = x.astype(jnp.bfloat16).astype(jnp.float32)
    w1b = w1.astype(jnp.bfloat16).astype(jnp.float32)
    h1 = jnp.maximum(xb @ w1b + b1, 0.0)
    h2 = jnp.maximum(h1 @ w2 + b2, 0.0)
    z = h2 @ w3 + b3
    return jax.nn.softmax(z, axis=0)


if __name__ == "__main__":
    key = jax.random.PRNGKey(0)
    k_in, k_par = jax.random.split(key)

    # small shapes: batch=8, channels=4, spatial=16x16 -> feature_dim_1 = 1024
    B, C, H, W = 8, 4, 16, 16
    feature_dim_1 = C * H * W
    feature_dim_2 = 32

    feature_map = jax.random.normal(k_in, (B, C, H, W), jnp.float32)
    params = init_params(k_par, feature_dim_1, feature_dim_2)
    ref = _reference(feature_map, params)

    # Path 1: default large tile -> single full-extent K block at these shapes.
    prep_big = prepare_weights(params, B)                  # one-time prep (hoisted)
    out = jax.block_until_ready(weight_predictor_forward(feature_map, prep_big))
    assert out.shape == (B, 1)
    assert jnp.allclose(out, ref, atol=2e-3, rtol=2e-2), (out, ref)
    assert abs(float(jnp.sum(out)) - 1.0) < 1e-5           # exact-divide softmax

    # Path 2: small tile to exercise the multi-step K grid (1024 / 256 = 4).
    prep_small = prepare_weights(params, B, tk=256)
    out2 = jax.block_until_ready(weight_predictor_forward(feature_map, prep_small))
    assert jnp.allclose(out2, ref, atol=2e-3, rtol=2e-2), (out2, ref)
    assert abs(float(jnp.sum(out2)) - 1.0) < 1e-5

    print("KERNEL_OK")
</pallas_src>

<mosaic_0001>
module attributes {stable_mosaic.version = 11 : i64} {
  func.func @_mlp_softmax_kernel(%arg0: i32, %arg1: memref<8x1024xf32, #tpu.memory_space<vmem>>, %arg2: memref<1024x32xbf16, #tpu.memory_space<vmem>>, %arg3: memref<1x32xf32, #tpu.memory_space<vmem>>, %arg4: memref<32x32xf32, #tpu.memory_space<vmem>>, %arg5: memref<1x32xf32, #tpu.memory_space<vmem>>, %arg6: memref<1x32xf32, #tpu.memory_space<vmem>>, %arg7: memref<1x1xf32, #tpu.memory_space<vmem>>, %arg8: memref<8x1xf32, #tpu.memory_space<vmem>>, %arg9: memref<8x32xf32, #tpu.memory_space<vmem>>) attributes {dimension_semantics = [#tpu.dimension_semantics<arbitrary>], iteration_bounds = array<i64: 1>, scalar_prefetch = 0 : i64, scratch_operands = 1 : i64, tpu.core_type = #tpu.core_type<tc>, window_params = [{transform_indices = @transform_0, window_bounds = array<i64: 8, 1024>}, {transform_indices = @transform_1, window_bounds = array<i64: 1024, 32>}, {pipeline_mode = #tpu.pipeline_mode<synchronous>, transform_indices = @transform_2, window_bounds = array<i64: 1, 32>}, {pipeline_mode = #tpu.pipeline_mode<synchronous>, transform_indices = @transform_3, window_bounds = array<i64: 32, 32>}, {pipeline_mode = #tpu.pipeline_mode<synchronous>, transform_indices = @transform_4, window_bounds = array<i64: 1, 32>}, {pipeline_mode = #tpu.pipeline_mode<synchronous>, transform_indices = @transform_5, window_bounds = array<i64: 1, 32>}, {pipeline_mode = #tpu.pipeline_mode<synchronous>, transform_indices = @transform_6, window_bounds = array<i64: 1, 1>}, {pipeline_mode = #tpu.pipeline_mode<synchronous>, transform_indices = @transform_7, window_bounds = array<i64: 8, 1>}]} {
    %c0_i32 = arith.constant 0 : i32
    %0 = arith.cmpi eq, %arg0, %c0_i32 : i32
    %1 = arith.extui %0 : i1 to i32
    %c0_i32_0 = arith.constant 0 : i32
    %2 = arith.cmpi ne, %1, %c0_i32_0 : i32
    scf.if %2 {
      %cst_10 = arith.constant 0.000000e+00 : f32
      %13 = vector.broadcast %cst_10 : f32 to vector<8x32xf32>
      %c0_11 = arith.constant 0 : index
      %c0_12 = arith.constant 0 : index
      %14 = vector.load %arg9[%c0_11, %c0_12] : memref<8x32xf32, #tpu.memory_space<vmem>>, vector<8x32xf32>
      tpu.vector_store %arg9[%c0_11, %c0_12], %13 {strides = array<i32>} : memref<8x32xf32, #tpu.memory_space<vmem>>, vector<8x32xf32>,
    } else {
    }
    %c0 = arith.constant 0 : index
    %c0_1 = arith.constant 0 : index
    %3 = vector.load %arg9[%c0, %c0_1] : memref<8x32xf32, #tpu.memory_space<vmem>>, vector<8x32xf32>
    %c0_2 = arith.constant 0 : index
    %c0_3 = arith.constant 0 : index
    %4 = vector.load %arg1[%c0_2, %c0_3] : memref<8x1024xf32, #tpu.memory_space<vmem>>, vector<8x1024xf32>
    %5 = arith.truncf %4 : vector<8x1024xf32> to vector<8x1024xbf16>
    %c0_4 = arith.constant 0 : index
    %c0_5 = arith.constant 0 : index
    %6 = vector.load %arg2[%c0_4, %c0_5] : memref<1024x32xbf16, #tpu.memory_space<vmem>>, vector<1024x32xbf16>
    %cst = arith.constant dense<0.000000e+00> : vector<8x32xf32>
    %7 = tpu.matmul %5, %6, %cst {dimension_numbers = #tpu.dot_dimension_numbers<[1], [0], [0], [1], [0, 0, 1, 1], [], []>} : vector<8x1024xbf16>, vector<1024x32xbf16>, vector<8x32xf32> -> vector<8x32xf32>
    %8 = arith.addf %3, %7 : vector<8x32xf32>
    %c0_6 = arith.constant 0 : index
    %c0_7 = arith.constant 0 : index
    %9 = vector.load %arg9[%c0_6, %c0_7] : memref<8x32xf32, #tpu.memory_space<vmem>>, vector<8x32xf32>
    tpu.vector_store %arg9[%c0_6, %c0_7], %8 {strides = array<i32>} : memref<8x32xf32, #tpu.memory_space<vmem>>, vector<8x32xf32>,
    %c0_i32_8 = arith.constant 0 : i32
    %10 = arith.cmpi eq, %arg0, %c0_i32_8 : i32
    %11 = arith.extui %10 : i1 to i32
    %c0_i32_9 = arith.constant 0 : i32
    %12 = arith.cmpi ne, %11, %c0_i32_9 : i32
    scf.if %12 {
      %c0_10 = arith.constant 0 : index
      %c0_11 = arith.constant 0 : index
      %13 = vector.load %arg9[%c0_10, %c0_11] : memref<8x32xf32, #tpu.memory_space<vmem>>, vector<8x32xf32>
      %c0_12 = arith.constant 0 : index
      %c0_13 = arith.constant 0 : index
      %14 = vector.load %arg3[%c0_12, %c0_13] : memref<1x32xf32, #tpu.memory_space<vmem>>, vector<1x32xf32>
      %15 = vector.broadcast %14 : vector<1x32xf32> to vector<8x32xf32>
      %16 = arith.addf %13, %15 : vector<8x32xf32>
      %cst_14 = arith.constant 0.000000e+00 : f32
      %17 = vector.broadcast %cst_14 : f32 to vector<8x32xf32>
      %18 = arith.maximumf %16, %17 : vector<8x32xf32>
      %c0_15 = arith.constant 0 : index
      %c0_16 = arith.constant 0 : index
      %19 = vector.load %arg4[%c0_15, %c0_16] : memref<32x32xf32, #tpu.memory_space<vmem>>, vector<32x32xf32>
      %cst_17 = arith.constant dense<0.000000e+00> : vector<8x32xf32>
      %20 = tpu.matmul %18, %19, %cst_17 {dimension_numbers = #tpu.dot_dimension_numbers<[1], [0], [0], [1], [0, 0, 1, 1], [], []>} : vector<8x32xf32>, vector<32x32xf32>, vector<8x32xf32> -> vector<8x32xf32>
      %c0_18 = arith.constant 0 : index
      %c0_19 = arith.constant 0 : index
      %21 = vector.load %arg5[%c0_18, %c0_19] : memref<1x32xf32, #tpu.memory_space<vmem>>, vector<1x32xf32>
      %22 = vector.broadcast %21 : vector<1x32xf32> to vector<8x32xf32>
      %23 = arith.addf %20, %22 : vector<8x32xf32>
      %cst_20 = arith.constant 0.000000e+00 : f32
      %24 = vector.broadcast %cst_20 : f32 to vector<8x32xf32>
      %25 = arith.maximumf %23, %24 : vector<8x32xf32>
      %c0_21 = arith.constant 0 : index
      %c0_22 = arith.constant 0 : index
      %26 = vector.load %arg6[%c0_21, %c0_22] : memref<1x32xf32, #tpu.memory_space<vmem>>, vector<1x32xf32>
      %27 = vector.broadcast %26 : vector<1x32xf32> to vector<8x32xf32>
      %28 = arith.mulf %25, %27 : vector<8x32xf32>
      %cst_23 = arith.constant dense<0.000000e+00> : vector<8xf32>
      %29 = vector.multi_reduction <add>, %28, %cst_23 [1] : vector<8x32xf32> to vector<8xf32>
      %30 = vector.shape_cast %29 : vector<8xf32> to vector<8x1xf32>
      %c0_24 = arith.constant 0 : index
      %c0_25 = arith.constant 0 : index
      %31 = vector.load %arg7[%c0_24, %c0_25] : memref<1x1xf32, #tpu.memory_space<vmem>>, vector<1x1xf32>
      %32 = vector.broadcast %31 : vector<1x1xf32> to vector<8x1xf32>
      %33 = arith.addf %30, %32 : vector<8x1xf32>
      %cst_26 = arith.constant dense<0xFF800000> : vector<1xf32>
      %34 = vector.multi_reduction <maximumf>, %33, %cst_26 [0] : vector<8x1xf32> to vector<1xf32>
      %35 = vector.shape_cast %34 : vector<1xf32> to vector<1x1xf32>
      %36 = vector.broadcast %35 : vector<1x1xf32> to vector<8x1xf32>
      %37 = arith.subf %33, %36 : vector<8x1xf32>
      %38 = math.exp %37 : vector<8x1xf32>
      %cst_27 = arith.constant dense<0.000000e+00> : vector<1xf32>
      %39 = vector.multi_reduction <add>, %38, %cst_27 [0] : vector<8x1xf32> to vector<1xf32>
      %40 = vector.shape_cast %39 : vector<1xf32> to vector<1x1xf32>
      %41 = vector.broadcast %40 : vector<1x1xf32> to vector<8x1xf32>
      %42 = arith.divf %38, %41 : vector<8x1xf32>
      %c0_28 = arith.constant 0 : index
      %c0_29 = arith.constant 0 : index
      %43 = vector.load %arg8[%c0_28, %c0_29] : memref<8x1xf32, #tpu.memory_space<vmem>>, vector<8x1xf32>
      tpu.vector_store %arg8[%c0_28, %c0_29], %42 {strides = array<i32>} : memref<8x1xf32, #tpu.memory_space<vmem>>, vector<8x1xf32>,
    } else {
    }
    return
  }
  func.func @transform_0(%arg0: i32) -> (i32, i32) {
    %c0_i32 = arith.constant 0 : i32
    %c0_i32_0 = arith.constant 0 : i32
    return %c0_i32, %arg0 : i32, i32
  }
  func.func @transform_1(%arg0: i32) -> (i32, i32) {
    %c0_i32 = arith.constant 0 : i32
    %c0_i32_0 = arith.constant 0 : i32
    return %arg0, %c0_i32 : i32, i32
  }
  func.func @transform_2(%arg0: i32) -> (i32, i32) {
    %c0_i32 = arith.constant 0 : i32
    %c0_i32_0 = arith.constant 0 : i32
    %c0_i32_1 = arith.constant 0 : i32
    return %c0_i32, %c0_i32_0 : i32, i32
  }
  func.func @transform_3(%arg0: i32) -> (i32, i32) {
    %c0_i32 = arith.constant 0 : i32
    %c0_i32_0 = arith.constant 0 : i32
    %c0_i32_1 = arith.constant 0 : i32
    return %c0_i32, %c0_i32_0 : i32, i32
  }
  func.func @transform_4(%arg0: i32) -> (i32, i32) {
    %c0_i32 = arith.constant 0 : i32
    %c0_i32_0 = arith.constant 0 : i32
    %c0_i32_1 = arith.constant 0 : i32
    return %c0_i32, %c0_i32_0 : i32, i32
  }
  func.func @transform_5(%arg0: i32) -> (i32, i32) {
    %c0_i32 = arith.constant 0 : i32
    %c0_i32_0 = arith.constant 0 : i32
    %c0_i32_1 = arith.constant 0 : i32
    return %c0_i32, %c0_i32_0 : i32, i32
  }
  func.func @transform_6(%arg0: i32) -> (i32, i32) {
    %c0_i32 = arith.constant 0 : i32
    %c0_i32_0 = arith.constant 0 : i32
    %c0_i32_1 = arith.constant 0 : i32
    return %c0_i32, %c0_i32_0 : i32, i32
  }
  func.func @transform_7(%arg0: i32) -> (i32, i32) {
    %c0_i32 = arith.constant 0 : i32
    %c0_i32_0 = arith.constant 0 : i32
    %c0_i32_1 = arith.constant 0 : i32
    return %c0_i32, %c0_i32_0 : i32, i32
  }
}

</mosaic_0001>

<bundles_post_ra>
// kernel: tpu_custom_call.1
= control target key start
LH: loop header
LB: loop body
LE: loop exit
PB: predicated region body
PF: predicated region fallthrough
CT: control target
= control target key end

     0   :  { %vm32_vm0 = vcmask 261120   ;;  %vm725_vm1 = vcmask 7168   ;;  %s1384_s1 = inlined_call_operand.vmem [shape: bf16[1024,32], index: 1, kind: input, shape index: {}]   ;;  %s1385_s0 = inlined_call_operand.vmem [shape: f32[8,1024], index: 0, kind: input, shape index: {}]   ;;  %s1386_s2 = inlined_call_operand.vmem [shape: f32[1,32], index: 2, kind: input, shape index: {}]   ;;  %s1387_s4 = inlined_call_operand.vmem [shape: f32[1,32], index: 4, kind: input, shape index: {}]   ;;  %s1388_s3 = inlined_call_operand.vmem [shape: f32[32,32], index: 3, kind: input, shape index: {}]   ;;  %s1389_s5 = inlined_call_operand.vmem [shape: f32[1,32], index: 5, kind: input, shape index: {}]   ;;  %s1390_s6 = inlined_call_operand.<no memory space> [shape: f32[1,1], index: 6, kind: input, shape index: {}]   ;;  %s1391_s7 = inlined_call_operand.vmem [shape: f32[8,1], index: 7, kind: output, shape index: {}]  }
   0x1   :  { %v1027_v0 = vld [vmem:[%s1384_s1 + $0x38] sm:$0xff]  ;;  %v1026_v4 = vld [vmem:[%s1384_s1 + $0x30] sm:$0xff]  ;;  %v1025_v8 = vld [vmem:[%s1384_s1 + $0x28] sm:$0xff] }
   0x2   :  { %v1035_v1 = vld [vmem:[%s1384_s1 + $0x78] sm:$0xff]  ;;  %563 = vmatpush.bf16.msra.mxu0 %v1027_v0  ;;  %v1034_v5 = vld [vmem:[%s1384_s1 + $0x70] sm:$0xff]  ;;  %v1033_v9 = vld [vmem:[%s1384_s1 + $0x68] sm:$0xff] }
   0x3   :  { %v1043_v2 = vld [vmem:[%s1384_s1 + $0xb8] sm:$0xff]  ;;  %576 = vmatpush.bf16.msra.mxu1 %v1035_v1  ;;  %v1042_v6 = vld [vmem:[%s1384_s1 + $0xb0] sm:$0xff]  ;;  %v1041_v10 = vld [vmem:[%s1384_s1 + $0xa8] sm:$0xff] }
   0x4   :  { %v1051_v3 = vld [vmem:[%s1384_s1 + $0xf8] sm:$0xff]  ;;  %589 = vmatpush.bf16.msra.mxu2 %v1043_v2  ;;  %v1050_v7 = vld [vmem:[%s1384_s1 + $0xf0] sm:$0xff]  ;;  %v1049_v11 = vld [vmem:[%s1384_s1 + $0xe8] sm:$0xff] }
   0x5   :  { %602 = vmatpush.bf16.msra.mxu3 %v1051_v3  ;;  %v1024_v12 = vld [vmem:[%s1384_s1 + $0x20] sm:$0xff]  ;;  %v1023_v16 = vld [vmem:[%s1384_s1 + $0x18] sm:$0xff]  ;;  %v1022_v20 = vld [vmem:[%s1384_s1 + $0x10] sm:$0xff] }
   0x6   :  { %564 = vmatpush.bf16.msra.mxu0 %v1026_v4  ;;  %v1032_v13 = vld [vmem:[%s1384_s1 + $0x60] sm:$0xff]  ;;  %v1031_v17 = vld [vmem:[%s1384_s1 + $0x58] sm:$0xff]  ;;  %v1030_v21 = vld [vmem:[%s1384_s1 + $0x50] sm:$0xff] }
   0x7   :  { %577 = vmatpush.bf16.msra.mxu1 %v1034_v5  ;;  %v1040_v14 = vld [vmem:[%s1384_s1 + $0xa0] sm:$0xff]  ;;  %v1039_v18 = vld [vmem:[%s1384_s1 + $0x98] sm:$0xff]  ;;  %v1038_v22 = vld [vmem:[%s1384_s1 + $0x90] sm:$0xff] }
   0x8   :  { %590 = vmatpush.bf16.msra.mxu2 %v1042_v6  ;;  %v1048_v15 = vld [vmem:[%s1384_s1 + $0xe0] sm:$0xff]  ;;  %v1047_v19 = vld [vmem:[%s1384_s1 + $0xd8] sm:$0xff]  ;;  %v1046_v23 = vld [vmem:[%s1384_s1 + $0xd0] sm:$0xff] }
   0x9   :  { %603 = vmatpush.bf16.msra.mxu3 %v1050_v7  ;;  %v1021_v24 = vld [vmem:[%s1384_s1 + $0x8] sm:$0xff]  ;;  %v1020_v28 = vld [vmem:[%s1384_s1] sm:$0xff]  ;;  %v1059_v32 = vld [vmem:[%s1384_s1 + $0x138] sm:$0xff] }
   0xa   :  { %565 = vmatpush.bf16.msra.mxu0 %v1025_v8  ;;  %v1029_v25 = vld [vmem:[%s1384_s1 + $0x48] sm:$0xff]  ;;  %v1028_v29 = vld [vmem:[%s1384_s1 + $0x40] sm:$0xff]  ;;  %v37_v33 = vld [vmem:[%s1385_s0 + $0x10] sm:$0xff] }
   0xb   :  { %578 = vmatpush.bf16.msra.mxu1 %v1033_v9  ;;  %v1037_v26 = vld [vmem:[%s1384_s1 + $0x88] sm:$0xff]  ;;  %v1036_v30 = vld [vmem:[%s1384_s1 + $0x80] sm:$0xff]  ;;  %v1067_v35 = vld [vmem:[%s1384_s1 + $0x178] sm:$0xff]  ;;  %v45_v40 = vpack.c.bf16 %v37_v33, %v37_v33 }
   0xc   :  { %591 = vmatpush.bf16.msra.mxu2 %v1041_v10  ;;  %v1045_v27 = vld [vmem:[%s1384_s1 + $0xc8] sm:$0xff]  ;;  %v1044_v31 = vld [vmem:[%s1384_s1 + $0xc0] sm:$0xff]  ;;  %v38_v36 = vld [vmem:[%s1385_s0 + $0x18] sm:$0xff] }
   0xd   :  { %604 = vmatpush.bf16.msra.mxu3 %v1049_v11  ;;  %v35_v34 = vld [vmem:[%s1385_s0] sm:$0xff]  ;;  %v36_v37 = vld [vmem:[%s1385_s0 + $0x8] sm:$0xff]  ;;  %v1075_v38 = vld [vmem:[%s1384_s1 + $0x1b8] sm:$0xff]  ;;  %v46_v42 = vpack.c.bf16 %v38_v36, %v38_v36 }
   0xe   :  { %566 = vmatpush.bf16.msra.mxu0 %v1024_v12  ;;  %v1083_v39 = vld [vmem:[%s1384_s1 + $0x1f8] sm:$0xff]  ;;  %v43_v41 = vpack.c.bf16 %v35_v34, %v35_v34  ;;  %v44_v43 = vpack.c.bf16 %v36_v37, %v36_v37  ;;  %v1058_v44 = vld [vmem:[%s1384_s1 + $0x130] sm:$0xff]  ;;  %v1057_v48 = vld [vmem:[%s1384_s1 + $0x128] sm:$0xff] }
   0xf   :  { %579 = vmatpush.bf16.msra.mxu1 %v1032_v13  ;;  %v1066_v45 = vld [vmem:[%s1384_s1 + $0x170] sm:$0xff]  ;;  %v1065_v49 = vld [vmem:[%s1384_s1 + $0x168] sm:$0xff]  ;;  %v1056_v52 = vld [vmem:[%s1384_s1 + $0x120] sm:$0xff] }
  0x10   :  { %592 = vmatpush.bf16.msra.mxu2 %v1040_v14  ;;  %v1074_v46 = vld [vmem:[%s1384_s1 + $0x1b0] sm:$0xff]  ;;  %v1073_v50 = vld [vmem:[%s1384_s1 + $0x1a8] sm:$0xff]  ;;  %v1064_v53 = vld [vmem:[%s1384_s1 + $0x160] sm:$0xff] }
  0x11   :  { %605 = vmatpush.bf16.msra.mxu3 %v1048_v15  ;;  %v1082_v47 = vld [vmem:[%s1384_s1 + $0x1f0] sm:$0xff]  ;;  %v1081_v51 = vld [vmem:[%s1384_s1 + $0x1e8] sm:$0xff]  ;;  %v1072_v54 = vld [vmem:[%s1384_s1 + $0x1a0] sm:$0xff] }
  0x12   :  { %567 = vmatpush.bf16.msra.mxu0 %v1023_v16  ;;  %v1080_v55 = vld [vmem:[%s1384_s1 + $0x1e0] sm:$0xff]  ;;  %v1055_v56 = vld [vmem:[%s1384_s1 + $0x118] sm:$0xff]  ;;  %v1054_v60 = vld [vmem:[%s1384_s1 + $0x110] sm:$0xff] }
  0x13   :  { %580 = vmatpush.bf16.msra.mxu1 %v1031_v17  ;;  %v1063_v57 = vld [vmem:[%s1384_s1 + $0x158] sm:$0xff]  ;;  %v1062_v61 = vld [vmem:[%s1384_s1 + $0x150] sm:$0xff]  ;;  %v1053_v0 = vld [vmem:[%s1384_s1 + $0x108] sm:$0xff] }
  0x14   :  { %593 = vmatpush.bf16.msra.mxu2 %v1039_v18  ;;  %v1071_v58 = vld [vmem:[%s1384_s1 + $0x198] sm:$0xff]  ;;  %v1070_v62 = vld [vmem:[%s1384_s1 + $0x190] sm:$0xff]  ;;  %v1061_v1 = vld [vmem:[%s1384_s1 + $0x148] sm:$0xff]  ;;  %v1093_v18 = vmov 0.0  }
  0x15   :  { %606 = vmatpush.bf16.msra.mxu3 %v1047_v19  ;;  %v1079_v59 = vld [vmem:[%s1384_s1 + $0x1d8] sm:$0xff]  ;;  %v1078_v63 = vld [vmem:[%s1384_s1 + $0x1d0] sm:$0xff]  ;;  %v1069_v2 = vld [vmem:[%s1384_s1 + $0x188] sm:$0xff]  ;;  %33 = vst.msk [vmem:[#allocation2] sm:$0xff] %vm32_vm0, %v1093_v18 }
  0x16   :  { %568 = vmatpush.bf16.msra.mxu0 %v1022_v20  ;;  %v1077_v3 = vld [vmem:[%s1384_s1 + $0x1c8] sm:$0xff]  ;;  %v1052_v4 = vld [vmem:[%s1384_s1 + $0x100] sm:$0xff]  ;;  %v41_v10 = vld [vmem:[%s1385_s0 + $0x30] sm:$0xff] }
  0x17   :  { %581 = vmatpush.bf16.msra.mxu1 %v1030_v21  ;;  %v1060_v5 = vld [vmem:[%s1384_s1 + $0x140] sm:$0xff]  ;;  %v40_v8 = vld [vmem:[%s1385_s0 + $0x28] sm:$0xff]  ;;  %v42_v11 = vld [vmem:[%s1385_s0 + $0x38] sm:$0xff]  ;;  %v49_v14 = vpack.c.bf16 %v41_v10, %v41_v10 }
  0x18   :  { %594 = vmatpush.bf16.msra.mxu2 %v1038_v22  ;;  %v1068_v6 = vld [vmem:[%s1384_s1 + $0x180] sm:$0xff]  ;;  %v48_v13 = vpack.c.bf16 %v40_v8, %v40_v8  ;;  %v50_v15 = vpack.c.bf16 %v42_v11, %v42_v11 }
  0x19   :  { %607 = vmatpush.bf16.msra.mxu3 %v1046_v23  ;;  %v39_v7 = vld [vmem:[%s1385_s0 + $0x20] sm:$0xff]  ;;  %v683_v23 = vld [vmem:[%s1388_s3 + $0x18] sm:$0xff] }
  0x1a   :  { %569 = vmatpush.bf16.msra.mxu0 %v1021_v24  ;;  %v1076_v9 = vld [vmem:[%s1384_s1 + $0x1c0] sm:$0xff]  ;;  %v47_v12 = vpack.c.bf16 %v39_v7, %v39_v7  ;;  %v682_v24 = vld [vmem:[%s1388_s3 + $0x10] sm:$0xff] }
  0x1b   :  { %582 = vmatpush.bf16.msra.mxu1 %v1029_v25  ;;  %v681_v25 = vld [vmem:[%s1388_s3 + $0x8] sm:$0xff] }
  0x1c   :  { %595 = vmatpush.bf16.msra.mxu2 %v1037_v26 }
  0x1d   :  { %608 = vmatpush.bf16.msra.mxu3 %v1045_v27 }
  0x1e   :  { %570 = vmatpush.bf16.msra.mxu0 %v1020_v28  ;;  %v680_v28 = vld [vmem:[%s1388_s3] sm:$0xff] }
  0x1f   :  { %583 = vmatpush.bf16.msra.mxu1 %v1028_v29 }
  0x20   :  { %596 = vmatpush.bf16.msra.mxu2 %v1036_v30 }
  0x21   :  { %609 = vmatpush.bf16.msra.mxu3 %v1044_v31  ;;  %571 = vmatmul.bf16.vlgmr.msra.gmra.mxu0 %v43_v41  ;;  %v34_v41 = vld [vmem:[#allocation2] sm:$0xff] }
  0x22   :  { %615 = vmatpush.bf16.msrb.mxu0 %v1059_v32  ;;  %584 = vmatmul.bf16.vlgmr.msra.gmra.mxu1 %v44_v43 }
  0x23   :  { %628 = vmatpush.bf16.msrb.mxu1 %v1067_v35  ;;  %597 = vmatmul.bf16.vlgmr.msra.gmra.mxu2 %v45_v40 }
  0x24   :  { %641 = vmatpush.bf16.msrb.mxu2 %v1075_v38  ;;  %610 = vmatmul.bf16.vlgmr.msra.gmra.mxu3 %v46_v42 }
  0x25   :  { %654 = vmatpush.bf16.msrb.mxu3 %v1083_v39 }
  0x26   :  { %616 = vmatpush.bf16.msrb.mxu0 %v1058_v44 }
  0x27   :  { %629 = vmatpush.bf16.msrb.mxu1 %v1066_v45 }
  0x28   :  { %642 = vmatpush.bf16.msrb.mxu2 %v1074_v46  ;;  %v1085_v46 = vld [vmem:[%s1386_s2] ss:$0 sm:$0xff] }
  0x29   :  { %655 = vmatpush.bf16.msrb.mxu3 %v1082_v47 }
  0x2a   :  { %617 = vmatpush.bf16.msrb.mxu0 %v1057_v48 }
  0x2b   :  { %630 = vmatpush.bf16.msrb.mxu1 %v1065_v49 }
  0x2c   :  { %643 = vmatpush.bf16.msrb.mxu2 %v1073_v50  ;;  %v12_v50 = vstv %s1390_s6 }
  0x2d   :  { %656 = vmatpush.bf16.msrb.mxu3 %v1081_v51  ;;  %13 = vst [vmem:[#allocation3] sm:$0x1] %v12_v50  ;;  %v1086_v51 = vld [vmem:[%s1387_s4] ss:$0 sm:$0xff] }
  0x2e   :  { %618 = vmatpush.bf16.msrb.mxu0 %v1056_v52 }
  0x2f   :  { %631 = vmatpush.bf16.msrb.mxu1 %v1064_v53 }
  0x30   :  { %644 = vmatpush.bf16.msrb.mxu2 %v1072_v54  ;;  %v1087_v54 = vld [vmem:[%s1389_s5] ss:$0 sm:$0xff] }
  0x31   :  { %657 = vmatpush.bf16.msrb.mxu3 %v1080_v55 }
  0x32   :  { %619 = vmatpush.bf16.msrb.mxu0 %v1055_v56 }
  0x33   :  { %632 = vmatpush.bf16.msrb.mxu1 %v1063_v57 }
  0x34   :  { %645 = vmatpush.bf16.msrb.mxu2 %v1071_v58  ;;  %v1088_v58 = vld [vmem:[#allocation3] ss:$0 sm:$0xff] }
  0x35   :  { %658 = vmatpush.bf16.msrb.mxu3 %v1079_v59 }
  0x36   :  { %620 = vmatpush.bf16.msrb.mxu0 %v1054_v60 }
  0x37   :  { %633 = vmatpush.bf16.msrb.mxu1 %v1062_v61 }
  0x38   :  { %646 = vmatpush.bf16.msrb.mxu2 %v1070_v62 }
  0x39   :  { %659 = vmatpush.bf16.msrb.mxu3 %v1078_v63 }
  0x3a   :  { %621 = vmatpush.bf16.msrb.mxu0 %v1053_v0 }
  0x3b   :  { %634 = vmatpush.bf16.msrb.mxu1 %v1061_v1 }
  0x3c   :  { %647 = vmatpush.bf16.msrb.mxu2 %v1069_v2 }
  0x3d   :  { %660 = vmatpush.bf16.msrb.mxu3 %v1077_v3 }
  0x3e   :  { %622 = vmatpush.bf16.msrb.mxu0 %v1052_v4 }
  0x3f   :  { %635 = vmatpush.bf16.msrb.mxu1 %v1060_v5 }
  0x40   :  { %648 = vmatpush.bf16.msrb.mxu2 %v1068_v6 }
  0x41   :  { %661 = vmatpush.bf16.msrb.mxu3 %v1076_v9  ;;  %623 = vmatmul.bf16.vlgmr.msrb.gmra.mxu0 %v47_v12 }
  0x42   :  { %636 = vmatmul.bf16.vlgmr.msrb.gmra.mxu1 %v48_v13  ;;  %703 = vmatpush.msra.mxu0 %v683_v23 }
  0x43   :  { %649 = vmatmul.bf16.vlgmr.msrb.gmra.mxu2 %v49_v14 }
  0x44   :  { %662 = vmatmul.bf16.vlgmr.msrb.gmra.mxu3 %v50_v15  ;;  %704 = vmatpush.msra.mxu0 %v682_v24 }
  0x46   :  { %705 = vmatpush.msra.mxu0 %v681_v25 }
  0x48   :  { %706 = vmatpush.msra.mxu0 %v680_v28 }
  0x9e   :  { %v572_v16 = vpop.f32.mrf.mxu0 }
  0x9f   :  { %v585_v17 = vpop.f32.mrf.mxu1 }
  0xa0   :  { %v586_v29 = vadd.f32 %v585_v17, %v572_v16 }
  0xa6   :  { %v598_v19 = vpop.f32.mrf.mxu2  ;;  %v574_v21 = vpop.f32.mrf.mxu0 }
  0xa7   :  { %v611_v20 = vpop.f32.mrf.mxu3  ;;  %v587_v22 = vpop.f32.mrf.mxu1  ;;  %v599_v30 = vadd.f32 %v598_v19, %v586_v29 }
  0xa9   :  { %v612_v31 = vadd.f32 %v611_v20, %v599_v30 }
  0xae   :  { %v600_v26 = vpop.f32.mrf.mxu2 }
  0xaf   :  { %v613_v27 = vpop.f32.mrf.mxu3 }
  0xbe   :  { %v624_v32 = vpop.f32.mrf.mxu0 }
  0xbf   :  { %v637_v33 = vpop.f32.mrf.mxu1  ;;  %v625_v34 = vadd.f32 %v624_v32, %v612_v31 }
  0xc1   :  { %v638_v35 = vadd.f32 %v637_v33, %v625_v34 }
  0xc6   :  { %v650_v36 = vpop.f32.mrf.mxu2  ;;  %v626_v39 = vpop.f32.mrf.mxu0 }
  0xc7   :  { %v663_v37 = vpop.f32.mrf.mxu3  ;;  %v651_v38 = vadd.f32 %v650_v36, %v638_v35  ;;  %v639_v40 = vpop.f32.mrf.mxu1 }
  0xc9   :  { %v664_v42 = vadd.f32 %v663_v37, %v651_v38 }
  0xcb   :  { %v667_v43 = vadd.f32 %v664_v42, %v34_v41 }
  0xcd   :  { %669 = vst.msk [vmem:[#allocation2] sm:$0xff] %vm32_vm0, %v667_v43 }
  0xce   :  { %v652_v44 = vpop.f32.mrf.mxu2 }
  0xcf   :  { %v665_v45 = vpop.f32.mrf.mxu3 }
  0xd4   :  { %v673_v47 = vld [vmem:[#allocation2] sm:$0xff] }
  0xd5   :  { %v678_v48 = vadd.f32 %v1085_v46, %v673_v47 }
  0xd7   :  { %v679_v49 = vmax.f32 %v678_v48, 0.0 }
  0xd9   :  { %1019 = vmatmul.msk.f32.vlgmr.msra.gmra.mxu0 %vm32_vm0, %v679_v49 }
 0x156   :  { %v708_v52 = vpop.f32.mrf.mxu0 }
 0x157   :  { %v709_v53 = vadd.f32 %v1086_v51, %v708_v52 }
 0x159   :  { %v711_v55 = vmax.f32 %v709_v53, 0.0 }
 0x15b   :  { %v716_v56 = vmul.f32 %v1087_v54, %v711_v55 }
 0x15d   :  { %v717_v57 = vsel %vm32_vm0, %v716_v56, 0.0 }
 0x15e   :  { %718 = vadd.xlane.f32.xlu0 %v717_v57 }
 0x1d1   :  { %v719_v59 = vpop.xlane.xlu0 %718 }
 0x1d2   :  { %v724_v60 = vadd.f32 %v1088_v58, %v719_v59 }
 0x1d4   :  { %v726_v61 = vsel %vm725_vm1, %v724_v60, -inf }
 0x1d5   :  { %v727_v62 = vrot.slane %v726_v61, 4 }
 0x1d7   :  { %v728_v63 = vmax.f32 %v726_v61, %v727_v62 }
 0x1d9   :  { %v729_v0 = vrot.slane %v728_v63, 2 }
 0x1db   :  { %v730_v1 = vmax.f32 %v728_v63, %v729_v0 }
 0x1dd   :  { %v731_v2 = vrot.slane %v730_v1, 1 }
 0x1df   :  { %v732_v3 = vmax.f32 %v730_v1, %v731_v2 }
 0x1e1   :  { %v733_v4 = vsub.f32 %v724_v60, %v732_v3 }
 0x1e3   :  { %v734_v5 = vmul.f32 1.442695, %v733_v4 }
 0x1e5   :  { %1089 = vpow2.f32 %v734_v5 }
 0x1eb   :  { %v1090_v6 = vpop.eup %1089 }
 0x1ec   :  { %v736_v7 = vsel %vm725_vm1, %v1090_v6, 0.0 }
 0x1ed   :  { %v737_v8 = vrot.slane %v736_v7, 4 }
 0x1ef   :  { %v738_v9 = vadd.f32 %v737_v8, %v736_v7 }
 0x1f1   :  { %v739_v10 = vrot.slane %v738_v9, 2 }
 0x1f3   :  { %v740_v11 = vadd.f32 %v739_v10, %v738_v9 }
 0x1f5   :  { %v741_v12 = vrot.slane %v740_v11, 1 }
 0x1f7   :  { %v742_v13 = vadd.f32 %v741_v12, %v740_v11 }
 0x1f9   :  { %1091 = vrcp.f32 %v742_v13  ;;  %v754_v17 = vand.u32 2147483648, %v742_v13  ;;  %v752_v19 = vand.u32 2147483647, %v742_v13  ;;  %vm748_vm3 = vweird.f32 %v742_v13 }
 0x1fb   :  { %v755_v21 = vor.u32 1.1754944e-38, %v754_v17  ;;  %vm753_vm5 = vcmp.eq.f32.partialorder %v752_v19, 8.507059e+37 }
 0x1ff   :  { %v1092_v14 = vpop.eup %1091 }
 0x200   :  { %v744_v15 = vmul.f32 %v1092_v14, %v742_v13  ;;  %vm749_vm2 = vweird.f32 %v1092_v14 }
 0x201   :  { %vm750_vm4 = vmor %vm748_vm3, %vm749_vm2 }
 0x202   :  { %v745_v16 = vsub.f32 1.0, %v744_v15 }
 0x204   :  { %v746_v18 = vmul.f32 %v1092_v14, %v745_v16 }
 0x206   :  { %v747_v20 = vadd.f32 %v1092_v14, %v746_v18 }
 0x208   :  { %v751_v22 = vsel %vm750_vm4, %v1092_v14, %v747_v20 }
 0x209   :  { %v756_v23 = vsel %vm753_vm5, %v755_v21, %v751_v22 }
 0x20a   :  { %v757_v24 = vmul.f32 %v1090_v6, %v756_v23 }
 0x20c   :  { %758 = vst.msk [vmem:[%s1391_s7] sm:$0xff] %vm725_vm1, %v757_v24 }

</bundles_post_ra>
